<compile_context>
chip_gen: v7x
topology: tpu7x:2x2x1
jax: 0.10.0
libtpu: 0.0.40
codegen_flags: <defaults>
</compile_context>

<pallas_src>
import jax
import jax.numpy as jnp
from jax import lax
from jax.experimental import pallas as pl
from jax.experimental.pallas import tpu as pltpu

# ----------------------------- small config -----------------------------
B, S, H = 2, 8, 32            # batch, seq, hidden_size
NH, KVH, HD = 4, 2, 8         # num_heads, num_key_value_heads, head_dim (NH*HD == H)
G = NH // KVH                 # GQA repeat factor
INTER = 64                    # LlamaMLP intermediate_size
MEM_HIDDEN = 64               # hidden width of the (simplified) neural-memory MLP
EPS = 1e-6                    # rms_norm_eps
ROPE_THETA = 10000.0
NEG_INF = -1e30

T = B * S                     # batch folded into the token dim
Q_DIM = NH * HD               # 32
KV_DIM = KVH * HD             # 16
QKV_COLS = 2 * Q_DIM + 3 * KV_DIM   # q | rot(q) | k | rot(k) | v  = 112

assert NH * HD == H           # slab packing below relies on this

# slab_h column offsets (rows = H); 128-wide fused blocks are 128-lane aligned.
C_GU = 0                      # gate|up          (128 cols)
C_QKV = C_GU + 2 * INTER      # fused qkv+rot    (112 cols) @ 128
C_WO = C_QKV + QKV_COLS       # o_proj           (32 cols)  @ 240
C_MWQ = C_WO + H              # memory q proj    (32 cols)  @ 272
C_M1 = C_MWQ + H              # memory mlp in    (64 cols)  @ 304

# slab_mid row offsets (cols = H)
R_WD = 0                      # down_proj        (INTER rows)
R_M2WO = INTER                # mem_m2 @ mem_wo  (MEM_HIDDEN rows)

# slab_tab column offsets (rows = T)
T_COS = 0
T_SIN = Q_DIM
T_MASK = 2 * Q_DIM


# ----------------------------- in-kernel head relayout helpers -----------------------------
def _to_heads(mat, n_heads):
    """(T, n_heads*HD) -> (n_heads, T, HD) using a 2-D transpose, a sublane-tile-aligned
    reshape and a batched minor-dims transpose (no per-head slice+stack)."""
    t = mat.shape[0]
    mt = mat.T.reshape(n_heads, HD, t)        # (n_heads*HD, T) -> split rows at 8-sublane tile
    return jnp.transpose(mt, (0, 2, 1))       # (n_heads, T, HD)


def _from_heads(oh):
    """(NH, T, HD) -> (T, NH*HD), inverse of _to_heads."""
    n, t, hd = oh.shape
    return jnp.transpose(oh, (0, 2, 1)).reshape(n * hd, t).T


# ----------------------------- fused decoder-layer kernel -----------------------------
def decoder_layer_kernel(x_ref, wh_ref, wm_ref, tab_ref, o_ref):
    f32 = jnp.float32
    x = x_ref[...].astype(f32)                                     # (T, H), T = B*S

    # ---- 1) Titans neural-memory branch (simplified retrieval) + residual ----
    # TODO(synk): test-time gradient/momentum/decay memory updates and the carried
    # memory_state of the original NeuralMemory are not reproduced (frozen retrieval only).
    mq = jnp.dot(x, wh_ref[:, C_MWQ:C_MWQ + H], preferred_element_type=f32)
    # TODO(synk): verify L2 query norm vs the reference NeuralMemory (RMS vs L2 differ by sqrt(H)).
    mq = mq * lax.rsqrt(jnp.sum(mq * mq, axis=-1, keepdims=True) + 1e-6)
    mh = jax.nn.silu(jnp.dot(mq, wh_ref[:, C_M1:C_M1 + MEM_HIDDEN], preferred_element_type=f32))
    x = x + jnp.dot(mh, wm_ref[R_M2WO:R_M2WO + MEM_HIDDEN, :], preferred_element_type=f32)

    # ---- 2) self-attention (input RMSNorm weight folded into the fused QKV weight) ----
    xn = x * lax.rsqrt(jnp.mean(x * x, axis=-1, keepdims=True) + EPS)
    # ONE fused matmul producing [q | rotate_half(q) | k | rotate_half(k) | v];
    # 1/sqrt(HD) score scale is pre-folded into the q columns.
    qkv = jnp.dot(xn, wh_ref[:, C_QKV:C_QKV + QKV_COLS], preferred_element_type=f32)  # (T, 112)
    o_q, o_qr = 0, Q_DIM
    o_k, o_kr, o_v = 2 * Q_DIM, 2 * Q_DIM + KV_DIM, 2 * Q_DIM + 2 * KV_DIM
    q, qr = qkv[:, o_q:o_q + Q_DIM], qkv[:, o_qr:o_qr + Q_DIM]
    k, kr = qkv[:, o_k:o_k + KV_DIM], qkv[:, o_kr:o_kr + KV_DIM]
    v = qkv[:, o_v:o_v + KV_DIM]

    cos = tab_ref[:, T_COS:T_COS + Q_DIM]                          # (T, NH*HD) per-head tiled
    sin = tab_ref[:, T_SIN:T_SIN + Q_DIM]
    q = q * cos + qr * sin                                         # HF RoPE (rotate_half folded)
    k = k * cos[:, :KV_DIM] + kr * sin[:, :KV_DIM]

    qh = _to_heads(q, NH)                                          # (NH, T, HD)
    kh = _to_heads(k, KVH)                                         # (KVH, T, HD)
    vh = _to_heads(v, KVH)
    qg = qh.reshape(KVH, G * T, HD)                                # grouped GQA, no KV duplication

    mask = tab_ref[:, T_MASK:T_MASK + T]                           # (T, T) block-diag causal
    mask_g = jnp.concatenate([mask] * G, axis=0)                   # (G*T, T)
    # TODO(synk): sliding-window masking (config.sliding_window) arrives via the external
    # attention_mask in HF; only the attention_mask=None causal path is reproduced.

    sc = jnp.einsum('cqd,ckd->cqk', qg, kh, preferred_element_type=f32) + mask_g[None]
    sc = sc - jnp.max(sc, axis=-1, keepdims=True)
    e = jnp.exp(sc)
    p = e / jnp.sum(e, axis=-1, keepdims=True)                     # exact divide (parity)
    og = jnp.einsum('cqk,ckd->cqd', p, vh, preferred_element_type=f32)  # (KVH, G*T, HD)

    attn = _from_heads(og.reshape(NH, T, HD))                      # (T, NH*HD)
    x = x + jnp.dot(attn, wh_ref[:, C_WO:C_WO + H], preferred_element_type=f32)

    # ---- 3) MLP (post-attn RMSNorm weight folded into the fused gate|up weight) ----
    xn = x * lax.rsqrt(jnp.mean(x * x, axis=-1, keepdims=True) + EPS)
    gu = jnp.dot(xn, wh_ref[:, C_GU:C_GU + 2 * INTER], preferred_element_type=f32)    # (T, 128)
    hmlp = jax.nn.silu(gu[:, :INTER]) * gu[:, INTER:]
    x = x + jnp.dot(hmlp, wm_ref[R_WD:R_WD + INTER, :], preferred_element_type=f32)

    o_ref[...] = x.astype(o_ref.dtype)


# ----------------------------- pallas_call wrapper -----------------------------
def titan_llama_decoder_layer(hidden_states, params):
    b, s, h = hidden_states.shape
    t = b * s
    x2d = hidden_states.reshape(t, h)                              # fold batch into tokens
    slab_h, slab_mid, slab_tab = params["slab_h"], params["slab_mid"], params["slab_tab"]

    # grid=(1,): single block (best on single-TC v5e/v6e; weights DMA'd once).
    # On v7x, a grid=(B,) "parallel" variant would use both TensorCores instead.
    # TODO(synk): at realistic H/INTER, tile the weight K/N dims (256-512), use
    # pipeline_mode=pl.Buffered(1) for constant-index weight specs and bf16 MXU inputs.
    out = pl.pallas_call(
        decoder_layer_kernel,
        grid=(1,),
        in_specs=[
            pl.BlockSpec((t, h), lambda i: (0, 0)),
            pl.BlockSpec(slab_h.shape, lambda i: (0, 0)),
            pl.BlockSpec(slab_mid.shape, lambda i: (0, 0)),
            pl.BlockSpec(slab_tab.shape, lambda i: (0, 0)),
        ],
        out_specs=pl.BlockSpec((t, h), lambda i: (0, 0)),
        out_shape=jax.ShapeDtypeStruct((t, h), hidden_states.dtype),
        compiler_params=pltpu.CompilerParams(
            dimension_semantics=("arbitrary",),
            vmem_limit_bytes=32 * 1024 * 1024,
        ),
    )(x2d, slab_h, slab_mid, slab_tab)
    return (out.reshape(b, s, h),)                                 # matches `outputs = (hidden_states,)`


# ----------------------------- parameter setup (host-side folding / packing) -----------------------------
def init_params(key):
    ks = jax.random.split(key, 11)
    std = 0.02

    def lin(k, out_dim, in_dim):   # nn.Linear stores (out,in); pre-transpose to (in,out)
        return (std * jax.random.normal(k, (out_dim, in_dim), jnp.float32)).T

    wq, wk, wv = lin(ks[0], Q_DIM, H), lin(ks[1], KV_DIM, H), lin(ks[2], KV_DIM, H)
    wo = lin(ks[3], H, Q_DIM)
    wg, wu, wd = lin(ks[4], INTER, H), lin(ks[5], INTER, H), lin(ks[6], H, INTER)
    ln1 = jnp.ones((H,), jnp.float32)
    ln2 = jnp.ones((H,), jnp.float32)
    mem_wq = lin(ks[7], H, H)
    mem_m1 = std * jax.random.normal(ks[8], (H, MEM_HIDDEN), jnp.float32)
    mem_m2 = std * jax.random.normal(ks[9], (MEM_HIDDEN, H), jnp.float32)
    mem_wo = lin(ks[10], H, H)

    # rotate_half as a per-head block-diagonal matrix, pre-multiplied into wq/wk.
    half = HD // 2
    rm = jnp.zeros((HD, HD), jnp.float32)
    rm = rm.at[jnp.arange(half) + half, jnp.arange(half)].set(-1.0)
    rm = rm.at[jnp.arange(half), jnp.arange(half) + half].set(1.0)
    rot_q = jnp.kron(jnp.eye(NH, dtype=jnp.float32), rm)           # (NH*HD, NH*HD)
    rot_k = jnp.kron(jnp.eye(KVH, dtype=jnp.float32), rm)          # (KVH*HD, KVH*HD)

    scale = HD ** -0.5
    # Fold RMSNorm weights (diag(ln) @ W) and the attention score scale into the weights.
    wq_c = ln1[:, None] * wq * scale
    wqr_c = ln1[:, None] * (wq @ rot_q) * scale
    wk_c = ln1[:, None] * wk
    wkr_c = ln1[:, None] * (wk @ rot_k)
    wv_c = ln1[:, None] * wv
    w_gu = ln2[:, None] * jnp.concatenate([wg, wu], axis=1)        # fused gate|up (H, 128)

    # Slab 1: all weights whose input dim is H (== NH*HD), concatenated along columns.
    slab_h = jnp.concatenate(
        [w_gu, wq_c, wqr_c, wk_c, wkr_c, wv_c, wo, mem_wq, mem_m1], axis=1)   # (H, 368)
    # Slab 2: H-output projections whose input dim is not H (down_proj, fused mem_m2@mem_wo).
    slab_mid = jnp.concatenate([wd, mem_m2 @ mem_wo], axis=0)                  # (128, H)

    # Slab 3: per-token tables for the batch-folded layout (T = B*S rows):
    # RoPE cos/sin tiled per batch and per head + block-diagonal causal mask.
    inv_freq = 1.0 / (ROPE_THETA ** (jnp.arange(0, HD, 2, dtype=jnp.float32) / HD))
    pos = jnp.arange(S, dtype=jnp.float32)
    emb = jnp.concatenate([pos[:, None] * inv_freq[None, :]] * 2, axis=-1)     # (S, HD)
    cos_q = jnp.tile(jnp.cos(emb), (B, NH))                                    # (T, NH*HD)
    sin_q = jnp.tile(jnp.sin(emb), (B, NH))
    tok = jnp.arange(T)
    same_batch = (tok[:, None] // S) == (tok[None, :] // S)
    causal = (tok[:, None] % S) >= (tok[None, :] % S)
    mask = jnp.where(same_batch & causal, 0.0, NEG_INF).astype(jnp.float32)    # (T, T)
    slab_tab = jnp.concatenate([cos_q, sin_q, mask], axis=1)                   # (T, 80)

    return {"slab_h": slab_h, "slab_mid": slab_mid, "slab_tab": slab_tab}


if __name__ == "__main__":
    key = jax.random.PRNGKey(0)
    k_x, k_p = jax.random.split(key)
    x = jax.random.normal(k_x, (B, S, H), jnp.float32)
    params = init_params(k_p)

    out = jax.jit(titan_llama_decoder_layer)(x, params)
    (y,) = jax.block_until_ready(out)
    assert y.shape == (B, S, H) and y.dtype == jnp.float32
    assert bool(jnp.all(jnp.isfinite(y)))
    print("KERNEL_OK")
</pallas_src>

<mosaic_0001>
module attributes {stable_mosaic.version = 11 : i64} {
  func.func @decoder_layer_kernel(%arg0: i32, %arg1: memref<16x32xf32, #tpu.memory_space<vmem>>, %arg2: memref<32x368xf32, #tpu.memory_space<vmem>>, %arg3: memref<128x32xf32, #tpu.memory_space<vmem>>, %arg4: memref<16x80xf32, #tpu.memory_space<vmem>>, %arg5: memref<16x32xf32, #tpu.memory_space<vmem>>) attributes {dimension_semantics = [#tpu.dimension_semantics<arbitrary>], iteration_bounds = array<i64: 1>, scalar_prefetch = 0 : i64, scratch_operands = 0 : i64, tpu.core_type = #tpu.core_type<tc>, window_params = [{pipeline_mode = #tpu.pipeline_mode<synchronous>, transform_indices = @transform_0, window_bounds = array<i64: 16, 32>}, {pipeline_mode = #tpu.pipeline_mode<synchronous>, transform_indices = @transform_1, window_bounds = array<i64: 32, 368>}, {pipeline_mode = #tpu.pipeline_mode<synchronous>, transform_indices = @transform_2, window_bounds = array<i64: 128, 32>}, {pipeline_mode = #tpu.pipeline_mode<synchronous>, transform_indices = @transform_3, window_bounds = array<i64: 16, 80>}, {pipeline_mode = #tpu.pipeline_mode<synchronous>, transform_indices = @transform_4, window_bounds = array<i64: 16, 32>}]} {
    %c0 = arith.constant 0 : index
    %c0_0 = arith.constant 0 : index
    %0 = vector.load %arg1[%c0, %c0_0] : memref<16x32xf32, #tpu.memory_space<vmem>>, vector<16x32xf32>
    %c0_1 = arith.constant 0 : index
    %c272 = arith.constant 272 : index
    %1 = vector.load %arg2[%c0_1, %c272] : memref<32x368xf32, #tpu.memory_space<vmem>>, vector<32x32xf32>
    %cst = arith.constant dense<0.000000e+00> : vector<16x32xf32>
    %2 = tpu.matmul %0, %1, %cst {dimension_numbers = #tpu.dot_dimension_numbers<[1], [0], [0], [1], [0, 0, 1, 1], [], []>} : vector<16x32xf32>, vector<32x32xf32>, vector<16x32xf32> -> vector<16x32xf32>
    %3 = arith.mulf %2, %2 : vector<16x32xf32>
    %cst_2 = arith.constant dense<0.000000e+00> : vector<16xf32>
    %4 = vector.multi_reduction <add>, %3, %cst_2 [1] : vector<16x32xf32> to vector<16xf32>
    %5 = vector.shape_cast %4 : vector<16xf32> to vector<16x1xf32>
    %cst_3 = arith.constant 9.99999997E-7 : f32
    %6 = vector.broadcast %cst_3 : f32 to vector<16x1xf32>
    %7 = arith.addf %5, %6 : vector<16x1xf32>
    %8 = math.rsqrt %7 : vector<16x1xf32>
    %9 = vector.broadcast %8 : vector<16x1xf32> to vector<16x32xf32>
    %10 = arith.mulf %2, %9 : vector<16x32xf32>
    %c0_4 = arith.constant 0 : index
    %c304 = arith.constant 304 : index
    %11 = vector.load %arg2[%c0_4, %c304] : memref<32x368xf32, #tpu.memory_space<vmem>>, vector<32x64xf32>
    %cst_5 = arith.constant dense<0.000000e+00> : vector<16x64xf32>
    %12 = tpu.matmul %10, %11, %cst_5 {dimension_numbers = #tpu.dot_dimension_numbers<[1], [0], [0], [1], [0, 0, 1, 1], [], []>} : vector<16x32xf32>, vector<32x64xf32>, vector<16x64xf32> -> vector<16x64xf32>
    %13 = arith.negf %12 : vector<16x64xf32>
    %14 = math.exp %13 : vector<16x64xf32>
    %cst_6 = arith.constant 1.000000e+00 : f32
    %15 = vector.broadcast %cst_6 : f32 to vector<16x64xf32>
    %16 = arith.addf %15, %14 : vector<16x64xf32>
    %17 = arith.divf %15, %16 : vector<16x64xf32>
    %18 = arith.mulf %12, %17 : vector<16x64xf32>
    %c64 = arith.constant 64 : index
    %c0_7 = arith.constant 0 : index
    %19 = vector.load %arg3[%c64, %c0_7] : memref<128x32xf32, #tpu.memory_space<vmem>>, vector<64x32xf32>
    %cst_8 = arith.constant dense<0.000000e+00> : vector<16x32xf32>
    %20 = tpu.matmul %18, %19, %cst_8 {dimension_numbers = #tpu.dot_dimension_numbers<[1], [0], [0], [1], [0, 0, 1, 1], [], []>} : vector<16x64xf32>, vector<64x32xf32>, vector<16x32xf32> -> vector<16x32xf32>
    %21 = arith.addf %0, %20 : vector<16x32xf32>
    %22 = arith.mulf %21, %21 : vector<16x32xf32>
    %cst_9 = arith.constant dense<0.000000e+00> : vector<16xf32>
    %23 = vector.multi_reduction <add>, %22, %cst_9 [1] : vector<16x32xf32> to vector<16xf32>
    %24 = vector.shape_cast %23 : vector<16xf32> to vector<16x1xf32>
    %cst_10 = arith.constant 3.200000e+01 : f32
    %25 = vector.broadcast %cst_10 : f32 to vector<16x1xf32>
    %26 = arith.divf %24, %25 : vector<16x1xf32>
    %cst_11 = arith.constant 9.99999997E-7 : f32
    %27 = vector.broadcast %cst_11 : f32 to vector<16x1xf32>
    %28 = arith.addf %26, %27 : vector<16x1xf32>
    %29 = math.rsqrt %28 : vector<16x1xf32>
    %30 = vector.broadcast %29 : vector<16x1xf32> to vector<16x32xf32>
    %31 = arith.mulf %21, %30 : vector<16x32xf32>
    %c0_12 = arith.constant 0 : index
    %c128 = arith.constant 128 : index
    %32 = vector.load %arg2[%c0_12, %c128] : memref<32x368xf32, #tpu.memory_space<vmem>>, vector<32x112xf32>
    %cst_13 = arith.constant dense<0.000000e+00> : vector<16x112xf32>
    %33 = tpu.matmul %31, %32, %cst_13 {dimension_numbers = #tpu.dot_dimension_numbers<[1], [0], [0], [1], [0, 0, 1, 1], [], []>} : vector<16x32xf32>, vector<32x112xf32>, vector<16x112xf32> -> vector<16x112xf32>
    %34 = vector.extract_strided_slice %33 {offsets = [0, 0], sizes = [16, 32], strides = [1, 1]} : vector<16x112xf32> to vector<16x32xf32>
    %35 = vector.extract_strided_slice %33 {offsets = [0, 32], sizes = [16, 32], strides = [1, 1]} : vector<16x112xf32> to vector<16x32xf32>
    %36 = vector.extract_strided_slice %33 {offsets = [0, 64], sizes = [16, 16], strides = [1, 1]} : vector<16x112xf32> to vector<16x16xf32>
    %37 = vector.extract_strided_slice %33 {offsets = [0, 80], sizes = [16, 16], strides = [1, 1]} : vector<16x112xf32> to vector<16x16xf32>
    %38 = vector.extract_strided_slice %33 {offsets = [0, 96], sizes = [16, 16], strides = [1, 1]} : vector<16x112xf32> to vector<16x16xf32>
    %c0_14 = arith.constant 0 : index
    %c0_15 = arith.constant 0 : index
    %39 = vector.load %arg4[%c0_14, %c0_15] : memref<16x80xf32, #tpu.memory_space<vmem>>, vector<16x32xf32>
    %c0_16 = arith.constant 0 : index
    %c32 = arith.constant 32 : index
    %40 = vector.load %arg4[%c0_16, %c32] : memref<16x80xf32, #tpu.memory_space<vmem>>, vector<16x32xf32>
    %41 = arith.mulf %34, %39 : vector<16x32xf32>
    %42 = arith.mulf %35, %40 : vector<16x32xf32>
    %43 = arith.addf %41, %42 : vector<16x32xf32>
    %44 = vector.extract_strided_slice %39 {offsets = [0, 0], sizes = [16, 16], strides = [1, 1]} : vector<16x32xf32> to vector<16x16xf32>
    %45 = arith.mulf %36, %44 : vector<16x16xf32>
    %46 = vector.extract_strided_slice %40 {offsets = [0, 0], sizes = [16, 16], strides = [1, 1]} : vector<16x32xf32> to vector<16x16xf32>
    %47 = arith.mulf %37, %46 : vector<16x16xf32>
    %48 = arith.addf %45, %47 : vector<16x16xf32>
    %49 = tpu.transpose %43, [1, 0] : vector<16x32xf32> -> vector<32x16xf32>
    %50 = vector.shape_cast %49 : vector<32x16xf32> to vector<4x8x16xf32>
    %51 = tpu.transpose %50, [0, 2, 1] : vector<4x8x16xf32> -> vector<4x16x8xf32>
    %52 = tpu.transpose %48, [1, 0] : vector<16x16xf32> -> vector<16x16xf32>
    %53 = vector.shape_cast %52 : vector<16x16xf32> to vector<2x8x16xf32>
    %54 = tpu.transpose %53, [0, 2, 1] : vector<2x8x16xf32> -> vector<2x16x8xf32>
    %55 = tpu.transpose %38, [1, 0] : vector<16x16xf32> -> vector<16x16xf32>
    %56 = vector.shape_cast %55 : vector<16x16xf32> to vector<2x8x16xf32>
    %57 = tpu.transpose %56, [0, 2, 1] : vector<2x8x16xf32> -> vector<2x16x8xf32>
    %58 = vector.shape_cast %51 : vector<4x16x8xf32> to vector<2x32x8xf32>
    %c0_17 = arith.constant 0 : index
    %c64_18 = arith.constant 64 : index
    %59 = vector.load %arg4[%c0_17, %c64_18] : memref<16x80xf32, #tpu.memory_space<vmem>>, vector<16x16xf32>
    %60 = tpu.concatenate %59, %59 in 0 : vector<16x16xf32>, vector<16x16xf32> -> vector<32x16xf32>
    "tpu.trace_start"() <{level = 10 : i32, message = "cqd,ckd->cqk"}> : () -> ()
    %cst_19 = arith.constant dense<0.000000e+00> : vector<2x32x16xf32>
    %61 = tpu.matmul %58, %54, %cst_19 {dimension_numbers = #tpu.dot_dimension_numbers<[2], [2], [1], [1], [0, 0, 0, 1, 1, 1], [0], [0]>} : vector<2x32x8xf32>, vector<2x16x8xf32>, vector<2x32x16xf32> -> vector<2x32x16xf32>
    "tpu.trace_stop"() : () -> ()
    %62 = vector.shape_cast %60 : vector<32x16xf32> to vector<1x32x16xf32>
    %63 = vector.broadcast %62 : vector<1x32x16xf32> to vector<2x32x16xf32>
    %64 = arith.addf %61, %63 : vector<2x32x16xf32>
    %cst_20 = arith.constant dense<0xFF800000> : vector<2x32xf32>
    %65 = vector.multi_reduction <maximumf>, %64, %cst_20 [2] : vector<2x32x16xf32> to vector<2x32xf32>
    %66 = vector.shape_cast %65 : vector<2x32xf32> to vector<2x32x1xf32>
    %67 = vector.broadcast %66 : vector<2x32x1xf32> to vector<2x32x16xf32>
    %68 = arith.subf %64, %67 : vector<2x32x16xf32>
    %69 = math.exp %68 : vector<2x32x16xf32>
    %cst_21 = arith.constant dense<0.000000e+00> : vector<2x32xf32>
    %70 = vector.multi_reduction <add>, %69, %cst_21 [2] : vector<2x32x16xf32> to vector<2x32xf32>
    %71 = vector.shape_cast %70 : vector<2x32xf32> to vector<2x32x1xf32>
    %72 = vector.broadcast %71 : vector<2x32x1xf32> to vector<2x32x16xf32>
    %73 = arith.divf %69, %72 : vector<2x32x16xf32>
    "tpu.trace_start"() <{level = 10 : i32, message = "cqk,ckd->cqd"}> : () -> ()
    %cst_22 = arith.constant dense<0.000000e+00> : vector<2x32x8xf32>
    %74 = tpu.matmul %73, %57, %cst_22 {dimension_numbers = #tpu.dot_dimension_numbers<[2], [1], [1], [2], [0, 0, 0, 1, 1, 2], [0], [0]>} : vector<2x32x16xf32>, vector<2x16x8xf32>, vector<2x32x8xf32> -> vector<2x32x8xf32>
    "tpu.trace_stop"() : () -> ()
    %75 = vector.shape_cast %74 : vector<2x32x8xf32> to vector<4x16x8xf32>
    %76 = tpu.transpose %75, [0, 2, 1] : vector<4x16x8xf32> -> vector<4x8x16xf32>
    %77 = vector.shape_cast %76 : vector<4x8x16xf32> to vector<32x16xf32>
    %78 = tpu.transpose %77, [1, 0] : vector<32x16xf32> -> vector<16x32xf32>
    %c0_23 = arith.constant 0 : index
    %c240 = arith.constant 240 : index
    %79 = vector.load %arg2[%c0_23, %c240] : memref<32x368xf32, #tpu.memory_space<vmem>>, vector<32x32xf32>
    %cst_24 = arith.constant dense<0.000000e+00> : vector<16x32xf32>
    %80 = tpu.matmul %78, %79, %cst_24 {dimension_numbers = #tpu.dot_dimension_numbers<[1], [0], [0], [1], [0, 0, 1, 1], [], []>} : vector<16x32xf32>, vector<32x32xf32>, vector<16x32xf32> -> vector<16x32xf32>
    %81 = arith.addf %21, %80 : vector<16x32xf32>
    %82 = arith.mulf %81, %81 : vector<16x32xf32>
    %cst_25 = arith.constant dense<0.000000e+00> : vector<16xf32>
    %83 = vector.multi_reduction <add>, %82, %cst_25 [1] : vector<16x32xf32> to vector<16xf32>
    %84 = vector.shape_cast %83 : vector<16xf32> to vector<16x1xf32>
    %cst_26 = arith.constant 3.200000e+01 : f32
    %85 = vector.broadcast %cst_26 : f32 to vector<16x1xf32>
    %86 = arith.divf %84, %85 : vector<16x1xf32>
    %cst_27 = arith.constant 9.99999997E-7 : f32
    %87 = vector.broadcast %cst_27 : f32 to vector<16x1xf32>
    %88 = arith.addf %86, %87 : vector<16x1xf32>
    %89 = math.rsqrt %88 : vector<16x1xf32>
    %90 = vector.broadcast %89 : vector<16x1xf32> to vector<16x32xf32>
    %91 = arith.mulf %81, %90 : vector<16x32xf32>
    %c0_28 = arith.constant 0 : index
    %c0_29 = arith.constant 0 : index
    %92 = vector.load %arg2[%c0_28, %c0_29] : memref<32x368xf32, #tpu.memory_space<vmem>>, vector<32x128xf32>
    %cst_30 = arith.constant dense<0.000000e+00> : vector<16x128xf32>
    %93 = tpu.matmul %91, %92, %cst_30 {dimension_numbers = #tpu.dot_dimension_numbers<[1], [0], [0], [1], [0, 0, 1, 1], [], []>} : vector<16x32xf32>, vector<32x128xf32>, vector<16x128xf32> -> vector<16x128xf32>
    %94 = vector.extract_strided_slice %93 {offsets = [0, 0], sizes = [16, 64], strides = [1, 1]} : vector<16x128xf32> to vector<16x64xf32>
    %95 = arith.negf %94 : vector<16x64xf32>
    %96 = math.exp %95 : vector<16x64xf32>
    %cst_31 = arith.constant 1.000000e+00 : f32
    %97 = vector.broadcast %cst_31 : f32 to vector<16x64xf32>
    %98 = arith.addf %97, %96 : vector<16x64xf32>
    %99 = arith.divf %97, %98 : vector<16x64xf32>
    %100 = arith.mulf %94, %99 : vector<16x64xf32>
    %101 = vector.extract_strided_slice %93 {offsets = [0, 64], sizes = [16, 64], strides = [1, 1]} : vector<16x128xf32> to vector<16x64xf32>
    %102 = arith.mulf %100, %101 : vector<16x64xf32>
    %c0_32 = arith.constant 0 : index
    %c0_33 = arith.constant 0 : index
    %103 = vector.load %arg3[%c0_32, %c0_33] : memref<128x32xf32, #tpu.memory_space<vmem>>, vector<64x32xf32>
    %cst_34 = arith.constant dense<0.000000e+00> : vector<16x32xf32>
    %104 = tpu.matmul %102, %103, %cst_34 {dimension_numbers = #tpu.dot_dimension_numbers<[1], [0], [0], [1], [0, 0, 1, 1], [], []>} : vector<16x64xf32>, vector<64x32xf32>, vector<16x32xf32> -> vector<16x32xf32>
    %105 = arith.addf %81, %104 : vector<16x32xf32>
    %c0_35 = arith.constant 0 : index
    %c0_36 = arith.constant 0 : index
    %106 = vector.load %arg5[%c0_35, %c0_36] : memref<16x32xf32, #tpu.memory_space<vmem>>, vector<16x32xf32>
    tpu.vector_store %arg5[%c0_35, %c0_36], %105 {strides = array<i32>} : memref<16x32xf32, #tpu.memory_space<vmem>>, vector<16x32xf32>,
    return
  }
  func.func @transform_0(%arg0: i32) -> (i32, i32) {
    %c0_i32 = arith.constant 0 : i32
    %c0_i32_0 = arith.constant 0 : i32
    %c0_i32_1 = arith.constant 0 : i32
    return %c0_i32, %c0_i32_0 : i32, i32
  }
  func.func @transform_1(%arg0: i32) -> (i32, i32) {
    %c0_i32 = arith.constant 0 : i32
    %c0_i32_0 = arith.constant 0 : i32
    %c0_i32_1 = arith.constant 0 : i32
    return %c0_i32, %c0_i32_0 : i32, i32
  }
  func.func @transform_2(%arg0: i32) -> (i32, i32) {
    %c0_i32 = arith.constant 0 : i32
    %c0_i32_0 = arith.constant 0 : i32
    %c0_i32_1 = arith.constant 0 : i32
    return %c0_i32, %c0_i32_0 : i32, i32
  }
  func.func @transform_3(%arg0: i32) -> (i32, i32) {
    %c0_i32 = arith.constant 0 : i32
    %c0_i32_0 = arith.constant 0 : i32
    %c0_i32_1 = arith.constant 0 : i32
    return %c0_i32, %c0_i32_0 : i32, i32
  }
  func.func @transform_4(%arg0: i32) -> (i32, i32) {
    %c0_i32 = arith.constant 0 : i32
    %c0_i32_0 = arith.constant 0 : i32
    %c0_i32_1 = arith.constant 0 : i32
    return %c0_i32, %c0_i32_0 : i32, i32
  }
}

</mosaic_0001>

<bundles_post_ra>
// kernel: titan_llama_decoder_layer.1
= control target key start
LH: loop header
LB: loop body
LE: loop exit
PB: predicated region body
PF: predicated region fallthrough
CT: control target
= control target key end

     0   :  { %vm40_vm0 = vcmask 261120   ;;  %s2481_s0 = inlined_call_operand.vmem [shape: f32[16,32], index: 0, kind: input, shape index: {}]   ;;  %s2482_s1 = inlined_call_operand.vmem [shape: f32[32,368], index: 1, kind: input, shape index: {}]   ;;  %s2483_s2 = inlined_call_operand.vmem [shape: f32[128,32], index: 2, kind: input, shape index: {}]   ;;  %s2484_s3 = inlined_call_operand.vmem [shape: f32[16,80], index: 3, kind: input, shape index: {}]   ;;  %s2485_s4 = inlined_call_operand.hbm [shape: f32[16,32], index: 4, kind: output, shape index: {}]  }
   0x1   :  { %v2198_v0 = vld [vmem:[%s2482_s1 + $0x10] sm:$0xff]  ;;  %v2203_v1 = vld [vmem:[%s2482_s1 + $0x28] sm:$0xff]  ;;  %v2208_v2 = vld [vmem:[%s2482_s1 + $0x40] sm:$0xff] }
   0x2   :  { %v2046_v3 = vpack.i.bf16 %v2203_v1, %v2198_v0  ;;  %v2215_v4 = vld [vmem:[%s2482_s1 + $0x58] sm:$0xff]  ;;  %v2220_v5 = vld [vmem:[%s2481_s0] sm:$0xff] }
   0x3   :  { %1834 = vmatprep.mubr.msk.f32.mxu0 %vm40_vm0, %v2220_v5 }
   0x4   :  { %9 = vsyncpa [#allocation3], 0  ;;  %s2160_s25 = smov 112   ;;  %v2041_v6 = vpack.i.bf16 %v2215_v4, %v2208_v2  ;;  %v2231_v15 = vld [vmem:[%s2481_s0 + $0x8] sm:$0xff]  ;;  %s2161_s28 = smov 80   ;;  %v243_v38 = vld [vmem:[%s2483_s2 + $0x40] sm:$0xff] }
   0x5   :  { %2037 = vrot.lane.b32.xlu0 %v2046_v3, %s2160_s25  ;;  %v244_v39 = vld [vmem:[%s2483_s2 + $0x48] sm:$0xff]  ;;  %v245_v41 = vld [vmem:[%s2483_s2 + $0x50] sm:$0xff]  ;;  %v246_v42 = vld [vmem:[%s2483_s2 + $0x58] sm:$0xff]  ;;  %vm251_vm1 = vcmask 523264   ;;  %s2162_s30 = smov 48   ;;  %s2163_s5 = smov 64  }
   0x6   :  { %v1967_v40 = vpack.c.bf16 %v244_v39, %v243_v38  ;;  %v1971_v43 = vpack.c.bf16 %v246_v42, %v245_v41  ;;  %v247_v44 = vld [vmem:[%s2483_s2 + $0x60] sm:$0xff]  ;;  %v248_v45 = vld [vmem:[%s2483_s2 + $0x68] sm:$0xff]  ;;  %v249_v47 = vld [vmem:[%s2483_s2 + $0x70] sm:$0xff]  ;;  %vm719_vm2 = vcmask 64512   ;;  %vm914_vm3 = vcmask 130048   ;;  %s2166_s6 = smov 16  }
   0x7   :  { %v1975_v46 = vpack.c.bf16 %v248_v45, %v247_v44  ;;  %v250_v48 = vld [vmem:[%s2483_s2 + $0x78] sm:$0xff] }
   0x8   :  { %v1979_v49 = vpack.c.bf16 %v250_v48, %v249_v47 }
   0x9   :  { %2042 = vrot.lane.b32.xlu0 %v2041_v6, %s2160_s25 }
   0xd   :  { %2047 = vrot.lane.b32.xlu0 %v2046_v3, %s2161_s28 }
  0x77   :  { %v2038_v7 = vpop.permute.xlu0 %2037 }
  0x78   :  { %v2040_v8 = vunpack.i.h.bf16 %v2038_v7  ;;  %v2039_v9 = vunpack.i.l.bf16 %v2038_v7 }
  0x7a   :  { %v1951_v10 = vpack.c.bf16 %v2040_v8, %v2039_v9 }
  0x7b   :  { %v2043_v11 = vpop.permute.xlu0 %2042 }
  0x7c   :  { %v2045_v12 = vunpack.i.h.bf16 %v2043_v11  ;;  %v2044_v13 = vunpack.i.l.bf16 %v2043_v11  ;;  %1952 = vmatprep.subr.bf16.mxu0 %v1951_v10  ;;  %v2280_v11 = vld [vmem:[%s2482_s1 + $0x8] sm:$0xff] }
  0x7d   :  { %1954 = vmatpush3.bf16.msra.mxu0 %v1951_v10 }
  0x7e   :  { %v1955_v14 = vpack.c.bf16 %v2045_v12, %v2044_v13  ;;  %v2290_v12 = vld [vmem:[%s2482_s1 + $0x38] sm:$0xff] }
  0x7f   :  { %v2048_v22 = vpop.permute.xlu0 %2047 }
  0x80   :  { %1956 = vmatprep.subr.bf16.mxu0 %v1955_v14  ;;  %v2050_v23 = vunpack.i.h.bf16 %v2048_v22  ;;  %v2049_v24 = vunpack.i.l.bf16 %v2048_v22 }
  0x81   :  { %1958 = vmatpush3.bf16.msra.mxu0 %v1955_v14  ;;  %v2297_v14 = vld [vmem:[%s2482_s1 + $0x50] sm:$0xff] }
  0x82   :  { %v1959_v25 = vpack.c.bf16 %v2050_v23, %v2049_v24  ;;  %1968 = vmatprep.subr.bf16.mxu0 %v1967_v40 }
  0x84   :  { %1835 = vmatmul.mubr.msk.f32.vlgmr.msra.gmra.mrb[0].mxu0 %vm40_vm0, %v2231_v15  ;;  %1960 = vmatprep.subr.bf16.mxu1 %v1959_v25 }
  0x85   :  { %1962 = vmatpush3.bf16.msra.mxu1 %v1959_v25  ;;  %1970 = vmatpush3.bf16.msra.mxu0 %v1967_v40 }
  0x86   :  { %1972 = vmatprep.subr.bf16.mxu0 %v1971_v43 }
  0x89   :  { %1974 = vmatpush3.bf16.msra.mxu0 %v1971_v43 }
  0x8a   :  { %1976 = vmatprep.subr.bf16.mxu0 %v1975_v46 }
  0x8d   :  { %1978 = vmatpush3.bf16.msra.mxu0 %v1975_v46 }
  0x8e   :  { %1980 = vmatprep.subr.bf16.mxu0 %v1979_v49 }
  0x91   :  { %1982 = vmatpush3.bf16.msra.mxu0 %v1979_v49 }
 0x157   :  { %v1836_v16 = vpop.f32.mrb[0].mxu0 }
 0x158   :  { %v113_v17 = vpop.f32.mrb[1].mxu0  ;;  %v123_v18 = vmul.f32 %v1836_v16, %v1836_v16 }
 0x159   :  { %v122_v19 = vmul.f32 %v113_v17, %v113_v17 }
 0x15a   :  { %v127_v20 = vsel %vm40_vm0, %v123_v18, 0.0 }
 0x15b   :  { %128 = vadd.xlane.f32.xlu1 %v127_v20  ;;  %v124_v21 = vsel %vm40_vm0, %v122_v19, 0.0 }
 0x15f   :  { %125 = vadd.xlane.f32.xlu1 %v124_v21 }
 0x170   :  { %2052 = vrot.lane.b32.xlu1 %v2041_v6, %s2161_s28 }
 0x1e8   :  { %v129_v26 = vpop.xlane.xlu1 %128 }
 0x1e9   :  { %v131_v27 = vadd.f32 1e-06, %v129_v26 }
 0x1eb   :  { %2076 = vrsqrt.f32 %v131_v27 }
 0x1ec   :  { %v126_v28 = vpop.xlane.xlu1 %125 }
 0x1ed   :  { %v130_v29 = vadd.f32 1e-06, %v126_v28 }
 0x1ef   :  { %2078 = vrsqrt.f32 %v130_v29 }
 0x1f0   :  { %v2053_v30 = vpop.permute.xlu1 %2052 }
 0x1f1   :  { %v2055_v31 = vunpack.i.h.bf16 %v2053_v30  ;;  %v2054_v32 = vunpack.i.l.bf16 %v2053_v30 }
 0x1f3   :  { %v1963_v33 = vpack.c.bf16 %v2055_v31, %v2054_v32 }
 0x1f5   :  { %1964 = vmatprep.subr.bf16.mxu1 %v1963_v33  ;;  %v2077_v34 = vpop.eup %2076 }
 0x1f6   :  { %1966 = vmatpush3.bf16.msra.mxu1 %v1963_v33  ;;  %v135_v37 = vmul.f32 %v2077_v34, %v1836_v16  ;;  %v437_v16 = vld [vmem:[%s2484_s3] sm:$0xff] }
 0x1f9   :  { %v2079_v35 = vpop.eup %2078 }
 0x1fa   :  { %v134_v36 = vmul.f32 %v2079_v35, %v113_v17  ;;  %v438_v17 = vld [vmem:[%s2484_s3 + $0x8] sm:$0xff]  ;;  %s2164_s3 = smov 96  }
 0x1fc   :  { %1845 = vmatprep.mubr.msk.f32.mxu1 %vm40_vm0, %v134_v36 }
 0x1fd   :  { %1846 = vmatmul.mubr.msk.f32.vlgmr.msra.gmra.mrb[0].mxu1 %vm40_vm0, %v135_v37 }
 0x2d0   :  { %v1847_v50 = vpop.f32.mrb[0].mxu1 }
 0x2d1   :  { %v1725_v51 = vmul.f32 -1.442695, %v1847_v50  ;;  %v220_v52 = vpop.f32.mrb[1].mxu1 }
 0x2d2   :  { %v1724_v53 = vmul.f32 -1.442695, %v220_v52 }
 0x2d3   :  { %2080 = vpow2.f32 %v1725_v51 }
 0x2d4   :  { %2082 = vpow2.f32 %v1724_v53 }
 0x2dd   :  { %v2081_v54 = vpop.eup %2080 }
 0x2de   :  { %v2083_v55 = vpop.eup %2082  ;;  %v236_v56 = vadd.f32 1.0, %v2081_v54 }
 0x2df   :  { %v235_v57 = vadd.f32 1.0, %v2083_v55 }
 0x2e0   :  { %2084 = vrcp.f32 %v236_v56 }
 0x2e1   :  { %2086 = vrcp.f32 %v235_v57 }
 0x2ea   :  { %v2085_v58 = vpop.eup %2084 }
 0x2eb   :  { %v2087_v59 = vpop.eup %2086  ;;  %v242_v61 = vmul.f32 %v2085_v58, %v1847_v50 }
 0x2ec   :  { %v241_v60 = vmul.f32 %v2087_v59, %v220_v52 }
 0x2ee   :  { %1864 = vmatprep.mubr.msk.f32.mxu0 %vm251_vm1, %v241_v60 }
 0x2ef   :  { %1865 = vmatmul.mubr.msk.f32.vlgmr.msra.gmra.mrb[2].mxu0 %vm251_vm1, %v242_v61 }
 0x3c2   :  { %v1866_v62 = vpop.f32.mrb[2].mxu0 }
 0x3c3   :  { %v2266_v63 = vadd.f32 %v1866_v62, %v2231_v15  ;;  %v324_v3 = vpop.f32.mrb[3].mxu0  ;;  %v1987_v15 = vpack.c.bf16 %v2297_v14, %v2290_v12 }
 0x3c4   :  { %v2269_v6 = vadd.f32 %v324_v3, %v2220_v5  ;;  %v2285_v5 = vld [vmem:[%s2482_s1 + $0x20] sm:$0xff] }
 0x3c5   :  { %v336_v7 = vmul.f32 %v2266_v63, %v2266_v63  ;;  %v1983_v13 = vpack.c.bf16 %v2285_v5, %v2280_v11 }
 0x3c6   :  { %v335_v8 = vmul.f32 %v2269_v6, %v2269_v6 }
 0x3c7   :  { %v340_v9 = vsel %vm40_vm0, %v336_v7, 0.0  ;;  %1984 = vmatprep.subr.bf16.mxu1 %v1983_v13 }
 0x3c8   :  { %341 = vadd.xlane.f32.xlu1 %v340_v9  ;;  %v337_v10 = vsel %vm40_vm0, %v335_v8, 0.0  ;;  %1986 = vmatpush3.bf16.msra.mxu1 %v1983_v13 }
 0x3c9   :  { %338 = vadd.xlane.f32.xlu0 %v337_v10  ;;  %1988 = vmatprep.subr.bf16.mxu1 %v1987_v15 }
 0x3cc   :  { %1990 = vmatpush3.bf16.msra.mxu1 %v1987_v15 }
 0x3d9   :  { %463 = vrot.lane.b32.xlu1 %v438_v17, %s2162_s30 }
 0x3df   :  { %461 = vrot.lane.b32.xlu0 %v437_v16, %s2162_s30 }
 0x3e3   :  { %453 = vrot.lane.b32.xlu0 %v437_v16, %s2163_s5 }
 0x3e7   :  { %455 = vrot.lane.b32.xlu0 %v438_v17, %s2163_s5 }
 0x455   :  { %v342_v18 = vpop.xlane.xlu1 %341 }
 0x456   :  { %v345_v19 = vmul.f32 0.03125, %v342_v18  ;;  %v339_v20 = vpop.xlane.xlu0 %338 }
 0x457   :  { %v344_v21 = vmul.f32 0.03125, %v339_v20 }
 0x458   :  { %v347_v22 = vadd.f32 1e-06, %v345_v19 }
 0x459   :  { %v346_v23 = vadd.f32 1e-06, %v344_v21  ;;  %v464_v33 = vpop.permute.xlu1 %463 }
 0x45a   :  { %2088 = vrsqrt.f32 %v347_v22  ;;  %v462_v29 = vpop.permute.xlu0 %461 }
 0x45b   :  { %2090 = vrsqrt.f32 %v346_v23 }
 0x45e   :  { %v2323_v36 = vpop.permute.xlu0 %453 }
 0x462   :  { %v2325_v37 = vpop.permute.xlu0 %455 }
 0x464   :  { %v2089_v24 = vpop.eup %2088 }
 0x465   :  { %v2091_v25 = vpop.eup %2090  ;;  %v351_v27 = vmul.f32 %v2089_v24, %v2266_v63 }
 0x466   :  { %v350_v26 = vmul.f32 %v2091_v25, %v2269_v6 }
 0x468   :  { %1875 = vmatprep.mubr.msk.f32.mxu1 %vm40_vm0, %v350_v26 }
 0x469   :  { %1876 = vmatmul.mubr.msk.f32.vlgmr.msra.gmra.mrb[2].mxu1 %vm40_vm0, %v351_v27 }
 0x53c   :  { %v2313_v28 = vpop.f32.mrb[2].mxu1 }
 0x53d   :  { %v2315_v30 = vpop.f32.mrb[3].mxu1  ;;  %v468_v34 = vmul.f32 %v2313_v28, %v464_v33  ;;  %v440_v35 = vmul.f32 %v2313_v28, %v438_v17  ;;  %v460_v41 = vmul.f32 %v2313_v28, %v2325_v37 }
 0x53e   :  { %v439_v31 = vmul.f32 %v437_v16, %v2315_v30  ;;  %v467_v32 = vmul.f32 %v462_v29, %v2315_v30  ;;  %v459_v38 = vmul.f32 %v2323_v36, %v2315_v30 }
 0x540   :  { %443 = vrot.lane.b32.xlu1 %v439_v31, %s2164_s3  ;;  %471 = vrot.lane.b32.xlu0 %v467_v32, %s2160_s25 }
 0x544   :  { %473 = vrot.lane.b32.xlu0 %v468_v34, %s2160_s25  ;;  %s2165_s25 = smov 32  }
 0x548   :  { %445 = vrot.lane.b32.xlu0 %v440_v35, %s2164_s3 }
 0x5b2   :  { %v472_v39 = vpop.permute.xlu0 %471  ;;  %v444_v44 = vpop.permute.xlu1 %443 }
 0x5b3   :  { %v477_v40 = vadd.f32 %v472_v39, %v459_v38  ;;  %v449_v45 = vadd.f32 %v444_v44, %v439_v31 }
 0x5b5   :  { %641 = vrot.lane.b32.xlu1 %v477_v40, %s2163_s5 }
 0x5b6   :  { %v474_v42 = vpop.permute.xlu0 %473 }
 0x5b7   :  { %v478_v43 = vadd.f32 %v474_v42, %v460_v41 }
 0x5b9   :  { %643 = vrot.lane.b32.xlu0 %v478_v43, %s2163_s5 }
 0x5ba   :  { %v446_v46 = vpop.permute.xlu0 %445 }
 0x5bb   :  { %v450_v47 = vadd.f32 %v446_v46, %v440_v35 }
 0x5de   :  { %479 = vxpose.xlu1.b32.start [1/2] (short) (narrow) %v449_v45, 32 }
 0x5e2   :  { %480 = vxpose.xlu1.b32.end [2/2] (short) (narrow) %v450_v47, 32 }
 0x627   :  { %v642_v48 = vpop.permute.xlu1 %641 }
 0x62b   :  { %v644_v52 = vpop.permute.xlu0 %643 }
 0x65e   :  { %v495_v49 = vpop.trf.xlu1 }
 0x65f   :  { %511 = vxpose.xlu0.b32.start.end [1/1] (short) (narrow) %v495_v49, 16 }
 0x662   :  { %v496_v50 = vpop.trf.xlu1 }
 0x664   :  { %647 = vxpose.xlu0.b32.start [1/2] (short) (narrow) %v642_v48, 16 }
 0x666   :  { %v497_v51 = vpop.trf.xlu1 }
 0x667   :  { %575 = vxpose.xlu1.b32.start.end [1/1] (short) (narrow) %v497_v51, 16 }
 0x668   :  { %648 = vxpose.xlu0.b32.end [2/2] (short) (narrow) %v644_v52, 16 }
 0x66a   :  { %v498_v53 = vpop.trf.xlu1 }
 0x66c   :  { %543 = vxpose.xlu0.b32.start.end [1/1] (short) (narrow) %v496_v50, 16 }
 0x671   :  { %607 = vxpose.xlu0.b32.start.end [1/1] (short) (narrow) %v498_v53, 16 }
 0x6df   :  { %v527_v54 = vpop.trf.xlu0 }
 0x6e0   :  { %1880 = vmatprep.mubr.msk.f32.mxu0 %vm719_vm2, %v527_v54 }
 0x6e3   :  { %v528_v55 = vpop.trf.xlu0 }
 0x6e7   :  { %v663_v56 = vpop.trf.xlu0  ;;  %v591_v57 = vpop.trf.xlu1 }
 0x6e8   :  { %1878 = vmatprep.subr.mxu0 %v663_v56  ;;  %2023 = vmatprep.subr.mxu1 %v663_v56 }
 0x6e9   :  { %1879 = vmatpush3.msra.mxu0 %v663_v56  ;;  %2024 = vmatpush3.msra.mxu1 %v663_v56 }
 0x6ea   :  { %1881 = vmatmul.mubr.msk.f32.vlgmr.msra.gmra.mrb[4].mxu0 %vm719_vm2, %v528_v55 }
 0x6eb   :  { %v664_v58 = vpop.trf.xlu0  ;;  %v592_v59 = vpop.trf.xlu1  ;;  %1888 = vmatprep.mubr.msk.f32.mxu0 %vm719_vm2, %v591_v57 }
 0x6ec   :  { %1886 = vmatprep.subr.mxu0 %v664_v58 }
 0x6ed   :  { %1887 = vmatpush3.msra.mxu0 %v664_v58 }
 0x6ee   :  { %1889 = vmatmul.mubr.msk.f32.vlgmr.msra.gmra.mrb[6].mxu0 %vm719_vm2, %v592_v59 }
 0x6ef   :  { %v559_v60 = vpop.trf.xlu0 }
 0x6f0   :  { %1883 = vmatprep.mubr.msk.f32.mxu1 %vm719_vm2, %v559_v60 }
 0x6f3   :  { %v560_v61 = vpop.trf.xlu0 }
 0x6f4   :  { %1884 = vmatmul.mubr.msk.f32.vlgmr.msra.gmra.mrb[4].mxu1 %vm719_vm2, %v560_v61 }
 0x6f7   :  { %v623_v62 = vpop.trf.xlu0 }
 0x6f8   :  { %1891 = vmatprep.mubr.msk.f32.mxu0 %vm719_vm2, %v623_v62 }
 0x6fb   :  { %v624_v3 = vpop.trf.xlu0 }
 0x6fc   :  { %1892 = vmatmul.mubr.msk.f32.gmra.mrb[8].mxu0 %vm719_vm2, %v624_v3 }
 0x7bd   :  { %v1882_v7 = vpop.f32.mrb[4].mxu0 }
 0x7be   :  { %v804_v8 = vadd.f32 %v1882_v7, %v2325_v37  ;;  %v798_v9 = vpop.f32.mrb[5].mxu0 }
 0x7bf   :  { %v799_v10 = vadd.f32 %v798_v9, %v2323_v36 }
 0x7c0   :  { %v918_v13 = vsel %vm914_vm3, %v804_v8, -inf }
 0x7c1   :  { %919 = vmax.xlane.f32.xlu1 %v918_v13  ;;  %v1890_v15 = vpop.f32.mrb[6].mxu0  ;;  %v915_v16 = vsel %vm914_vm3, %v799_v10, -inf }
 0x7c2   :  { %916 = vmax.xlane.f32.xlu0 %v915_v16  ;;  %v895_v17 = vpop.f32.mrb[7].mxu0  ;;  %v901_v19 = vadd.f32 %v1890_v15, %v2325_v37 }
 0x7c3   :  { %v896_v18 = vadd.f32 %v895_v17, %v2323_v36 }
 0x7c4   :  { %v930_v24 = vsel %vm914_vm3, %v901_v19, -inf }
 0x7c5   :  { %v927_v20 = vsel %vm914_vm3, %v896_v18, -inf }
 0x7c6   :  { %928 = vmax.xlane.f32.xlu0 %v927_v20 }
 0x7c7   :  { %v1885_v21 = vpop.f32.mrb[4].mxu1 }
 0x7c8   :  { %v814_v22 = vadd.f32 %v1885_v21, %v2325_v37  ;;  %v808_v23 = vpop.f32.mrb[5].mxu1 }
 0x7c9   :  { %v809_v25 = vadd.f32 %v808_v23, %v2323_v36 }
 0x7ca   :  { %931 = vmax.xlane.f32.xlu0 %v930_v24  ;;  %v924_v26 = vsel %vm914_vm3, %v814_v22, -inf }
 0x7cb   :  { %925 = vmax.xlane.f32.xlu1 %v924_v26  ;;  %v921_v27 = vsel %vm914_vm3, %v809_v25, -inf }
 0x7cf   :  { %922 = vmax.xlane.f32.xlu1 %v921_v27  ;;  %v1893_v29 = vpop.f32.mrb[8].mxu0 }
 0x7d0   :  { %v911_v31 = vadd.f32 %v1893_v29, %v2325_v37  ;;  %v905_v32 = vpop.f32.mrb[9].mxu0 }
 0x7d1   :  { %v906_v33 = vadd.f32 %v905_v32, %v2323_v36 }
 0x7d2   :  { %v936_v34 = vsel %vm914_vm3, %v911_v31, -inf }
 0x7d3   :  { %937 = vmax.xlane.f32.xlu0 %v936_v34  ;;  %v933_v35 = vsel %vm914_vm3, %v906_v33, -inf }
 0x7d4   :  { %934 = vmax.xlane.f32.xlu1 %v933_v35 }
 0x7e5   :  { %681 = vrot.lane.b32.xlu1 %v2315_v30, %s2165_s25 }
 0x7e9   :  { %683 = vrot.lane.b32.xlu0 %v2313_v28, %s2165_s25 }
 0x84e   :  { %v920_v38 = vpop.xlane.xlu1 %919 }
 0x84f   :  { %v940_v39 = vsub.f32 %v804_v8, %v920_v38  ;;  %v917_v40 = vpop.xlane.xlu0 %916 }
 0x850   :  { %v939_v36 = vsub.f32 %v799_v10, %v917_v40 }
 0x851   :  { %v949_v41 = vmul.f32 1.442695, %v940_v39 }
 0x852   :  { %v947_v49 = vmul.f32 1.442695, %v939_v36 }
 0x853   :  { %2092 = vpow2.f32 %v949_v41  ;;  %v929_v37 = vpop.xlane.xlu0 %928 }
 0x854   :  { %v943_v42 = vsub.f32 %v896_v18, %v929_v37 }
 0x856   :  { %v955_v43 = vmul.f32 1.442695, %v943_v42 }
 0x857   :  { %v932_v44 = vpop.xlane.xlu0 %931 }
 0x858   :  { %2094 = vpow2.f32 %v955_v43  ;;  %v944_v45 = vsub.f32 %v901_v19, %v932_v44  ;;  %v926_v46 = vpop.xlane.xlu1 %925 }
 0x859   :  { %v942_v47 = vsub.f32 %v814_v22, %v926_v46  ;;  %v2056_v22 = vpack.i.bf16 %v2198_v0, %v2280_v11 }
 0x85a   :  { %v957_v48 = vmul.f32 1.442695, %v944_v45 }
 0x85b   :  { %v953_v50 = vmul.f32 1.442695, %v942_v47 }
 0x85c   :  { %2096 = vpow2.f32 %v957_v48  ;;  %v923_v30 = vpop.xlane.xlu1 %922 }
 0x85d   :  { %v2359_v28 = vpop.eup %2092  ;;  %2098 = vpow2.f32 %v953_v50  ;;  %v941_v51 = vsub.f32 %v809_v25, %v923_v30 }
 0x85e   :  { %v966_v52 = vsel %vm914_vm3, %v2359_v28, 0.0  ;;  %2100 = vpow2.f32 %v947_v49 }
 0x85f   :  { %v951_v53 = vmul.f32 1.442695, %v941_v51  ;;  %967 = vadd.xlane.f32.xlu0 %v966_v52 }
 0x860   :  { %v938_v54 = vpop.xlane.xlu0 %937 }
 0x861   :  { %v946_v55 = vsub.f32 %v911_v31, %v938_v54  ;;  %v935_v56 = vpop.xlane.xlu1 %934  ;;  %2102 = vpow2.f32 %v951_v53 }
 0x862   :  { %v2095_v57 = vpop.eup %2094  ;;  %v945_v58 = vsub.f32 %v906_v33, %v935_v56  ;;  %v2071_v56 = vpack.i.bf16 %v2215_v4, %v2297_v14 }
 0x863   :  { %v961_v59 = vmul.f32 1.442695, %v946_v55  ;;  %v975_v60 = vsel %vm914_vm3, %v2095_v57, 0.0  ;;  %v2066_v55 = vpack.i.bf16 %v2208_v2, %v2290_v12 }
 0x864   :  { %v959_v61 = vmul.f32 1.442695, %v945_v58  ;;  %976 = vadd.xlane.f32.xlu0 %v975_v60  ;;  %v684_v21 = vpop.permute.xlu0 %683 }
 0x865   :  { %2104 = vpow2.f32 %v961_v59  ;;  %v682_v20 = vpop.permute.xlu1 %681 }
 0x866   :  { %v2364_v62 = vpop.eup %2096  ;;  %2106 = vpow2.f32 %v959_v61 }
 0x867   :  { %v2366_v3 = vpop.eup %2098  ;;  %v978_v7 = vsel %vm914_vm3, %v2364_v62, 0.0 }
 0x868   :  { %979 = vadd.xlane.f32.xlu0 %v978_v7  ;;  %v972_v8 = vsel %vm914_vm3, %v2366_v3, 0.0  ;;  %v2101_v9 = vpop.eup %2100 }
 0x869   :  { %973 = vadd.xlane.f32.xlu1 %v972_v8  ;;  %v963_v10 = vsel %vm914_vm3, %v2101_v9, 0.0 }
 0x86b   :  { %v2103_v13 = vpop.eup %2102 }
 0x86c   :  { %v969_v16 = vsel %vm914_vm3, %v2103_v13, 0.0 }
 0x86d   :  { %964 = vadd.xlane.f32.xlu1 %v963_v10 }
 0x86f   :  { %v2105_v15 = vpop.eup %2104 }
 0x870   :  { %v984_v17 = vsel %vm914_vm3, %v2105_v15, 0.0  ;;  %v2107_v18 = vpop.eup %2106 }
 0x871   :  { %970 = vadd.xlane.f32.xlu1 %v969_v16  ;;  %985 = vadd.xlane.f32.xlu0 %v984_v17  ;;  %v981_v19 = vsel %vm914_vm3, %v2107_v18, 0.0 }
 0x875   :  { %982 = vadd.xlane.f32.xlu1 %v981_v19 }
 0x8a8   :  { %687 = vxpose.xlu1.b32.start [1/2] (short) (narrow) %v682_v20, 16 }
 0x8ac   :  { %688 = vxpose.xlu1.b32.end [2/2] (short) (narrow) %v684_v21, 16 }
 0x8ca   :  { %2057 = vrot.lane.b32.xlu1 %v2056_v22, %s2166_s6 }
 0x8ec   :  { %v968_v23 = vpop.xlane.xlu0 %967 }
 0x8f1   :  { %v977_v24 = vpop.xlane.xlu0 %976 }
 0x8f2   :  { %2108 = vrcp.f32 %v977_v24 }
 0x8f5   :  { %v980_v0 = vpop.xlane.xlu0 %979 }
 0x8f6   :  { %v974_v25 = vpop.xlane.xlu1 %973 }
 0x8fa   :  { %v965_v26 = vpop.xlane.xlu1 %964 }
 0x8fb   :  { %2110 = vrcp.f32 %v965_v26 }
 0x8fc   :  { %v2109_v27 = vpop.eup %2108  ;;  %2112 = vrcp.f32 %v968_v23 }
 0x8fd   :  { %v996_v29 = vmul.f32 %v2109_v27, %v2095_v57  ;;  %v2061_v57 = vpack.i.bf16 %v2203_v1, %v2285_v5 }
 0x8fe   :  { %v971_v33 = vpop.xlane.xlu1 %970  ;;  %v986_v34 = vpop.xlane.xlu0 %985 }
 0x8ff   :  { %1904 = vmatprep.mubr.msk.f32.mxu0 %vm914_vm3, %v996_v29  ;;  %2114 = vrcp.f32 %v971_v33  ;;  %v1504_v33 = vld [vmem:[%s2482_s1 + $0x30] sm:$0xff] }
 0x900   :  { %2116 = vrcp.f32 %v980_v0  ;;  %v1505_v0 = vld [vmem:[%s2482_s1 + $0x48] sm:$0xff] }
 0x901   :  { %2118 = vrcp.f32 %v974_v25 }
 0x902   :  { %v983_v11 = vpop.xlane.xlu1 %982 }
 0x903   :  { %2120 = vrcp.f32 %v983_v11  ;;  %v2003_v11 = vpack.c.bf16 %v1505_v0, %v1504_v33 }
 0x904   :  { %2122 = vrcp.f32 %v986_v34 }
 0x905   :  { %v2111_v31 = vpop.eup %2110 }
 0x906   :  { %v988_v32 = vmul.f32 %v2111_v31, %v2101_v9  ;;  %v2113_v35 = vpop.eup %2112 }
 0x907   :  { %v990_v41 = vmul.f32 %v2113_v35, %v2359_v28 }
 0x908   :  { %1896 = vmatprep.mubr.msk.f32.mxu1 %vm914_vm3, %v988_v32 }
 0x909   :  { %v2115_v39 = vpop.eup %2114 }
 0x90a   :  { %v2117_v40 = vpop.eup %2116  ;;  %v992_v43 = vmul.f32 %v2115_v39, %v2103_v13 }
 0x90b   :  { %v2119_v37 = vpop.eup %2118  ;;  %v998_v44 = vmul.f32 %v2117_v40, %v2364_v62 }
 0x90c   :  { %v994_v45 = vmul.f32 %v2119_v37, %v2366_v3 }
 0x90d   :  { %v2121_v36 = vpop.eup %2120 }
 0x90e   :  { %v2123_v46 = vpop.eup %2122  ;;  %v1000_v47 = vmul.f32 %v2121_v36, %v2107_v18 }
 0x90f   :  { %v1002_v48 = vmul.f32 %v2123_v46, %v2105_v15  ;;  %v1613_v46 = vld [vmem:[%s2483_s2 + $0x10] sm:$0xff] }
 0x928   :  { %v703_v38 = vpop.trf.xlu1 }
 0x929   :  { %1894 = vmatprep.subr.msk.mxu1 %vm914_vm3, %v703_v38 }
 0x92a   :  { %1895 = vmatpush3.xpose.msk.msra.mxu1 %vm914_vm3, %v703_v38 }
 0x92c   :  { %v704_v42 = vpop.trf.xlu1 }
 0x92d   :  { %1897 = vmatmul.mubr.msk.f32.vlgmr.msra.gmra.mrb[6].mxu1 %vm914_vm3, %v990_v41  ;;  %1902 = vmatprep.subr.msk.mxu0 %vm914_vm3, %v704_v42 }
 0x92e   :  { %1899 = vmatprep.mubr.msk.f32.mxu1 %vm914_vm3, %v992_v43  ;;  %1903 = vmatpush3.xpose.msk.msra.mxu0 %vm914_vm3, %v704_v42 }
 0x931   :  { %1900 = vmatmul.mubr.msk.f32.gmra.mrb[8].mxu1 %vm914_vm3, %v994_v45  ;;  %1905 = vmatmul.mubr.msk.f32.vlgmr.msra.gmra.mrb[10].mxu0 %vm914_vm3, %v998_v44  ;;  %v1611_v44 = vld [vmem:[%s2483_s2] sm:$0xff]  ;;  %v1612_v45 = vld [vmem:[%s2483_s2 + $0x8] sm:$0xff] }
 0x932   :  { %1907 = vmatprep.mubr.msk.f32.mxu0 %vm914_vm3, %v1000_v47  ;;  %v2007_v47 = vpack.c.bf16 %v1612_v45, %v1611_v44 }
 0x935   :  { %1908 = vmatmul.mubr.msk.f32.gmra.mrb[12].mxu0 %vm914_vm3, %v1002_v48  ;;  %v1614_v48 = vld [vmem:[%s2483_s2 + $0x18] sm:$0xff] }
 0x93c   :  { %v2058_v59 = vpop.permute.xlu1 %2057 }
 0x93d   :  { %v2060_v8 = vunpack.i.h.bf16 %v2058_v59  ;;  %v2059_v9 = vunpack.i.l.bf16 %v2058_v59 }
 0x93f   :  { %v1395_v16 = vsel %vm914_vm3, %v2059_v9, %v2060_v8 }
 0xa00   :  { %v1898_v49 = vpop.f32.mrb[6].mxu1 }
 0xa01   :  { %v1084_v50 = vpop.f32.mrb[7].mxu1 }
 0xa02   :  { %1203 = vxpose.xlu0.b32.start [1/2] (short) (narrow) %v1084_v50, 8  ;;  %v1615_v50 = vld [vmem:[%s2483_s2 + $0x20] sm:$0xff] }
 0xa04   :  { %v1901_v30 = vpop.f32.mrb[8].mxu1  ;;  %v1906_v28 = vpop.f32.mrb[10].mxu0 }
 0xa05   :  { %v1094_v51 = vpop.f32.mrb[9].mxu1  ;;  %v1184_v52 = vpop.f32.mrb[11].mxu0 }
 0xa06   :  { %1204 = vxpose.xlu0.b32.end [2/2] (short) (narrow) %v1898_v49, 8  ;;  %1267 = vxpose.xlu1.b32.start [1/2] (short) (narrow) %v1184_v52, 8  ;;  %v2011_v49 = vpack.c.bf16 %v1614_v48, %v1613_v46  ;;  %v1618_v52 = vld [vmem:[%s2483_s2 + $0x38] sm:$0xff] }
 0xa08   :  { %v1909_v53 = vpop.f32.mrb[12].mxu0 }
 0xa09   :  { %v1194_v54 = vpop.f32.mrb[13].mxu0 }
 0xa0a   :  { %1235 = vxpose.xlu0.b32.start [1/2] (short) (narrow) %v1094_v51, 8  ;;  %1268 = vxpose.xlu1.b32.end [2/2] (short) (narrow) %v1906_v28, 8  ;;  %v1617_v51 = vld [vmem:[%s2483_s2 + $0x30] sm:$0xff] }
 0xa0e   :  { %1236 = vxpose.xlu0.b32.end [2/2] (short) (narrow) %v1901_v30, 8  ;;  %v1616_v30 = vld [vmem:[%s2483_s2 + $0x28] sm:$0xff]  ;;  %s2167_s2 = smov [#allocation2]  }
 0xa0f   :  { %v2015_v28 = vpack.c.bf16 %v1616_v30, %v1615_v50  ;;  %s1709_s30 = sshll.u32 %s2167_s2, 4  ;;  %s1710_s30 = int_to_ptr.vmem [resolvable:$true] %s1709_s30 }
 0xa10   :  { %p2141_p1 = scmp.lt.s32.totalorder %s1710_s30, %s1710_s30 }
 0xa12   :  { %1299 = vxpose.xlu0.b32.start [1/2] (short) (narrow) %v1194_v54, 8 }
 0xa16   :  { %1300 = vxpose.xlu0.b32.end [2/2] (short) (narrow) %v1909_v53, 8  ;;  %v2019_v53 = vpack.c.bf16 %v1618_v52, %v1617_v51 }
 0xa28   :  { %2067 = vrot.lane.b32.xlu1 %v2066_v55, %s2166_s6 }
 0xa2c   :  { %2072 = vrot.lane.b32.xlu1 %v2071_v56, %s2166_s6 }
 0xa3f   :  { %2062 = vrot.lane.b32.xlu0 %v2061_v57, %s2166_s6 }
 0xa82   :  { %v1219_v58 = vpop.trf.xlu0 }
 0xa83   :  { %1331 = vxpose.xlu1.b32.start [1/4] (short) (narrow) %v1219_v58, 16 }
 0xa86   :  { %v1283_v61 = vpop.trf.xlu1 }
 0xa8a   :  { %v1251_v60 = vpop.trf.xlu0 }
 0xa8b   :  { %1332 = vxpose.xlu1.b32.cont [2/4] (short) (narrow) %v1251_v60, 16 }
 0xa8f   :  { %1333 = vxpose.xlu1.b32.cont [3/4] (short) (narrow) %v1283_v61, 16 }
 0xa92   :  { %v1315_v2 = vpop.trf.xlu0 }
 0xa93   :  { %1334 = vxpose.xlu1.b32.end [4/4] (short) (narrow) %v1315_v2, 16 }
 0xa9a   :  { %v2068_v12 = vpop.permute.xlu1 %2067 }
 0xa9b   :  { %v2070_v3 = vunpack.i.h.bf16 %v2068_v12  ;;  %v2069_v4 = vunpack.i.l.bf16 %v2068_v12 }
 0xa9d   :  { %v1397_v13 = vsel %vm914_vm3, %v2069_v4, %v2070_v3 }
 0xa9e   :  { %v2073_v62 = vpop.permute.xlu1 %2072 }
 0xa9f   :  { %v2075_v14 = vunpack.i.h.bf16 %v2073_v62  ;;  %v2074_v7 = vunpack.i.l.bf16 %v2073_v62 }
 0xaa1   :  { %v1398_v15 = vsel %vm914_vm3, %v2074_v7, %v2075_v14 }
 0xaa2   :  { %v1995_v19 = vpack.c.bf16 %v1398_v15, %v1397_v13 }
 0xab1   :  { %v2063_v1 = vpop.permute.xlu0 %2062 }
 0xab2   :  { %v2065_v5 = vunpack.i.h.bf16 %v2063_v1  ;;  %v2064_v10 = vunpack.i.l.bf16 %v2063_v1 }
 0xab4   :  { %v1396_v17 = vsel %vm914_vm3, %v2064_v10, %v2065_v5 }
 0xab5   :  { %v1991_v18 = vpack.c.bf16 %v1396_v17, %v1395_v16 }
 0xab7   :  { %1992 = vmatprep.subr.bf16.mxu1 %v1991_v18 }
 0xab8   :  { %1994 = vmatpush3.bf16.msra.mxu1 %v1991_v18 }
 0xab9   :  { %1996 = vmatprep.subr.bf16.mxu1 %v1995_v19 }
 0xabc   :  { %1998 = vmatpush3.bf16.msra.mxu1 %v1995_v19 }
 0xabd   :  { %2008 = vmatprep.subr.bf16.mxu1 %v2007_v47 }
 0xb07   :  { %v1347_v20 = vpop.trf.xlu1 }
 0xb08   :  { %1918 = vmatprep.mubr.msk.f32.mxu1 %vm40_vm0, %v1347_v20 }
 0xb0b   :  { %v1348_v21 = vpop.trf.xlu1 }
 0xb0c   :  { %1919 = vmatmul.mubr.msk.f32.vlgmr.msra.gmra.mrb[10].mxu1 %vm40_vm0, %v1348_v21 }
 0xb0d   :  { %2010 = vmatpush3.bf16.msra.mxu1 %v2007_v47 }
 0xb0e   :  { %2012 = vmatprep.subr.bf16.mxu1 %v2011_v49 }
 0xb11   :  { %2014 = vmatpush3.bf16.msra.mxu1 %v2011_v49 }
 0xb12   :  { %2016 = vmatprep.subr.bf16.mxu1 %v2015_v28 }
 0xb15   :  { %2018 = vmatpush3.bf16.msra.mxu1 %v2015_v28 }
 0xb16   :  { %2020 = vmatprep.subr.bf16.mxu1 %v2019_v53 }
 0xb19   :  { %2022 = vmatpush3.bf16.msra.mxu1 %v2019_v53 }
 0xbdf   :  { %v1920_v22 = vpop.f32.mrb[10].mxu1 }
 0xbe0   :  { %v1475_v23 = vpop.f32.mrb[11].mxu1  ;;  %v2410_v24 = vadd.f32 %v1920_v22, %v2266_v63  ;;  %v1502_v63 = vld [vmem:[%s2482_s1] sm:$0xff] }
 0xbe1   :  { %v2413_v25 = vadd.f32 %v1475_v23, %v2269_v6  ;;  %v1503_v6 = vld [vmem:[%s2482_s1 + $0x18] sm:$0xff] }
 0xbe2   :  { %v1487_v29 = vmul.f32 %v2410_v24, %v2410_v24  ;;  %v1999_v32 = vpack.c.bf16 %v1503_v6, %v1502_v63 }
 0xbe3   :  { %v1486_v26 = vmul.f32 %v2413_v25, %v2413_v25 }
 0xbe4   :  { %v1491_v31 = vsel %vm40_vm0, %v1487_v29, 0.0  ;;  %2000 = vmatprep.subr.bf16.mxu0 %v1999_v32 }
 0xbe5   :  { %v1488_v27 = vsel %vm40_vm0, %v1486_v26, 0.0  ;;  %2002 = vmatpush3.bf16.msra.mxu0 %v1999_v32 }
 0xbe6   :  { %1489 = vadd.xlane.f32.xlu0 %v1488_v27  ;;  %2004 = vmatprep.subr.bf16.mxu0 %v2003_v11 }
 0xbe9   :  { %2006 = vmatpush3.bf16.msra.mxu0 %v2003_v11 }
 0xbea   :  { %1492 = vadd.xlane.f32.xlu0 %v1491_v31 }
 0xc73   :  { %v1490_v34 = vpop.xlane.xlu0 %1489 }
 0xc74   :  { %v1494_v35 = vmul.f32 0.03125, %v1490_v34 }
 0xc76   :  { %v1496_v38 = vadd.f32 1e-06, %v1494_v35 }
 0xc77   :  { %v1493_v39 = vpop.xlane.xlu0 %1492 }
 0xc78   :  { %2124 = vrsqrt.f32 %v1496_v38  ;;  %v1495_v40 = vmul.f32 0.03125, %v1493_v39 }
 0xc7a   :  { %v1497_v41 = vadd.f32 1e-06, %v1495_v40 }
 0xc7c   :  { %2126 = vrsqrt.f32 %v1497_v41 }
 0xc82   :  { %v2125_v37 = vpop.eup %2124 }
 0xc83   :  { %v1500_v42 = vmul.f32 %v2125_v37, %v2413_v25 }
 0xc85   :  { %1929 = vmatprep.mubr.msk.f32.mxu0 %vm40_vm0, %v1500_v42 }
 0xc86   :  { %v2127_v43 = vpop.eup %2126 }
 0xc87   :  { %v1501_v36 = vmul.f32 %v2127_v43, %v2410_v24 }
 0xc89   :  { %1930 = vmatmul.mubr.msk.f32.vlgmr.msra.gmra.mrb[14].mxu0 %vm40_vm0, %v1501_v36 }
 0xd5c   :  { %v1931_v54 = vpop.f32.mrb[14].mxu0 }
 0xd5d   :  { %1605 = vrot.lane.b32.xlu1 %v1931_v54, %s2163_s5  ;;  %v1578_v55 = vpop.f32.mrb[15].mxu0  ;;  %v1753_v57 = vmul.f32 -1.442695, %v1931_v54 }
 0xd5e   :  { %1603 = vrot.lane.b32.xlu0 %v1578_v55, %s2163_s5  ;;  %v1752_v56 = vmul.f32 -1.442695, %v1578_v55  ;;  %s2136_s5 = scalar_lea.vmem %s1710_s30, 256 }
 0xd5f   :  { %p2137_p0 = scmp.ne.s32.totalorder %s1710_s30, %s2136_s5  ;;  %p2142_p2 = scmp.lt.s32.totalorder %s2136_s5, %s2136_s5 }
 0xd60   :  { %2128 = vpow2.f32 %v1752_v56 }
 0xd61   :  { %2130 = vpow2.f32 %v1753_v57  ;;  %p2143_p3 = por %p2142_p2, %p2141_p1 }
 0xd63   :  { %p2144_p4 = pnand %p2143_p3, %p2137_p0 }
 0xd6a   :  { %v2129_v58 = vpop.eup %2128 }
 0xd6b   :  { %v2131_v59 = vpop.eup %2130  ;;  %v1593_v60 = vadd.f32 1.0, %v2129_v58 }
 0xd6c   :  { %v1594_v61 = vadd.f32 1.0, %v2131_v59 }
 0xd6d   :  { %2132 = vrcp.f32 %v1593_v60 }
 0xd6e   :  { %2134 = vrcp.f32 %v1594_v61 }
 0xd77   :  { %v2133_v2 = vpop.eup %2132 }
 0xd78   :  { %v2135_v12 = vpop.eup %2134  ;;  %v1599_v62 = vmul.f32 %v2133_v2, %v1578_v55 }
 0xd79   :  { %v1600_v4 = vmul.f32 %v2135_v12, %v1931_v54 }
 0xdcf   :  { %v1606_v3 = vpop.permute.xlu1 %1605 }
 0xdd0   :  { %v1604_v14 = vpop.permute.xlu0 %1603  ;;  %v1610_v8 = vmul.f32 %v1606_v3, %v1600_v4 }
 0xdd1   :  { %v1609_v7 = vmul.f32 %v1604_v14, %v1599_v62 }
 0xdd3   :  { %1948 = vmatprep.mubr.msk.f32.mxu1 %vm251_vm1, %v1609_v7 }
 0xdd4   :  { %1949 = vmatmul.mubr.msk.f32.vlgmr.msra.gmra.mrb[12].mxu1 %vm251_vm1, %v1610_v8 }
 0xea7   :  { %v1950_v9 = vpop.f32.mrb[12].mxu1 }
 0xea8   :  { %v1701_v1 = vadd.f32 %v1950_v9, %v2410_v24  ;;  %v1691_v5 = vpop.f32.mrb[13].mxu1 }
 0xea9   :  { %v1700_v10 = vadd.f32 %v1691_v5, %v2413_v25 }
 0xeaa   :  { %1703 = vst.msk [vmem:[#allocation2 + $0x8] sm:$0xff] %vm40_vm0, %v1701_v1 }
 0xeab   :  { %1702 = vst.msk [vmem:[#allocation2] sm:$0xff] %vm40_vm0, %v1700_v10 }
 0xeac   :  { %2147 = shalt.err (!%p2144_p4)
}
 0xead   :  { %s2148_s6 = scalar_lea.hbm %s2485_s4, 256 }
 0xeae   :  { %p2149_p5 = scmp.ne.s32.totalorder %s2485_s4, %s2148_s6  ;;  %p2152_p6 = scmp.lt.u32.totalorder %s2148_s6, %s2485_s4 }
 0xeb0   :  { %p2154_p7 = pnand %p2152_p6, %p2149_p5 }
 0xeb2   :  { %2157 = shalt.err (!%p2154_p7)
}
 0xeb3   :  { %s2168_s11 = smov 128   ;;  %s2169_s12 = smov 8  }
 0xeb4   :  { %1715 = dma.vmem_to_hbm [thread:$0]  %s1710_s30, 256, %s2485_s4, [#allocation3], %s2168_s11, %s2168_s11, %s2169_s12  }
 0xeb5   :  { %2158 = dma.done.wait [#allocation3], 256  }
 0xeb6   :  { %2159 = vsyncadd [#allocation3], 4294967040 }
 0xeb7   :  { %1719 = vsyncpa [#allocation3], 1 }

</bundles_post_ra>
